<compile_context>
chip_gen: v5e
topology: v5e:2x2
jax: 0.10.0
libtpu: 0.0.40
codegen_flags: <defaults>
</compile_context>

<pallas_src>
import functools

import jax
import jax.numpy as jnp
from jax.experimental import pallas as pl
from jax.experimental.pallas import tpu as pltpu

LEAK = 0.5  # nn.LeakyReLU(0.5)


def _leaky(x):
    return jnp.where(x > 0, x, LEAK * x)


# ---------------- fused Pallas kernel ----------------

def vae_fused_kernel(x_ref, eps_ref,
                     w11_ref, b11_ref, w12_ref, b12_ref, w13_ref, b13_ref,
                     w21_ref, b21_ref, w22_ref, b22_ref, wf_ref, bf_ref,
                     out_ref, kld_ref, *, B, step, bp):
    f32, bf16 = jnp.float32, jnp.bfloat16
    total = x_ref.shape[1]          # T * bp, with T == step
    T = total // bp

    def mxu(w_ref, act):
        # bf16 x bf16 MXU dot with f32 accumulation; elementwise math stays f32.
        return jnp.dot(w_ref[...], act.astype(bf16), preferred_element_type=f32)

    # ---- encoder MLP (output in the gapped 16-row feature layout; gap rows == 0) ----
    h = _leaky(mxu(w11_ref, x_ref[...]) + b11_ref[...])       # (20, T*bp)
    h = _leaky(mxu(w12_ref, h) + b12_ref[...])                # (20, T*bp)
    enc = _leaky(mxu(w13_ref, h) + b13_ref[...])              # (16, T*bp)

    # ---- latent: last timestep = lane-aligned static slice; mu/sigma = tile views ----
    lat = enc[:, (T - 1) * bp:]                               # (16, bp)
    mu = lat[:8, :]                                           # rows 0-5 valid
    sigma = lat[8:, :]                                        # rows 0-5 valid
    hz = mu + sigma * eps_ref[...]                            # reparameterized sample (8, bp)

    # ---- decoder MLP once per batch column (column-wise -> window applied after) ----
    d = _leaky(mxu(w21_ref, hz) + b21_ref[...])               # (20, bp)
    d = _leaky(mxu(w22_ref, d) + b22_ref[...])                # (16, bp), gap rows == 0

    # Block j (window position), column i (window index):
    #   decoder(h[i + j])      = left-roll decoder output by j
    #   encoder1[i+step, j, :] = left-roll encoder time-block j by `step`
    blocks = []
    for j in range(T):
        d_j = d if j == 0 else pltpu.roll(d, bp - j, axis=1)
        enc_j = enc[:, j * bp:(j + 1) * bp]                   # aligned free view
        res_j = pltpu.roll(enc_j, bp - step, axis=1)
        blocks.append(d_j + res_j)
    dec2 = jnp.concatenate(blocks, axis=1)                    # (16, T*bp)

    out = mxu(wf_ref, dec2) + bf_ref[...]                     # (12, T*bp)
    out_ref[...] = jax.nn.sigmoid(out).astype(out_ref.dtype)

    # ---- KLD over valid entries only (feature rows 0-5, lanes < B) ----
    row = jax.lax.broadcasted_iota(jnp.int32, mu.shape, 0)
    lane = jax.lax.broadcasted_iota(jnp.int32, mu.shape, 1)
    s2 = sigma * sigma
    val = mu * mu + s2 - jnp.log(1e-8 + s2) - 1.0
    val = jnp.where((row < 6) & (lane < B), val, 0.0)
    kld_ref[...] = (0.5 * jnp.sum(val, keepdims=True) / B).astype(kld_ref.dtype)


# ---------------- parameter init (deterministic, PyTorch nn.Linear style) ----------------

def init_linear(key, fan_in, fan_out):
    kw, kb = jax.random.split(key)
    bound = float(fan_in) ** -0.5
    w = jax.random.uniform(kw, (fan_out, fan_in), jnp.float32, -bound, bound)
    b = jax.random.uniform(kb, (fan_out, 1), jnp.float32, -bound, bound)
    return w, b


def init_params(key):
    keys = jax.random.split(key, 6)
    p = {}
    p["w11"], p["b11"] = init_linear(keys[0], 12, 20)
    p["w12"], p["b12"] = init_linear(keys[1], 20, 20)
    p["w13"], p["b13"] = init_linear(keys[2], 20, 12)
    p["w21"], p["b21"] = init_linear(keys[3], 6, 20)
    p["w22"], p["b22"] = init_linear(keys[4], 20, 12)
    p["wf"], p["bf"] = init_linear(keys[5], 12, 12)
    return p


def pack_params(p):
    """One-time repack: gapped 16-row feature layout + bf16 MXU weights (biases f32)."""
    bf16 = jnp.bfloat16

    def gap_rows(w, b):  # 12-feature outputs -> rows {0..5, 8..13}; gap rows are zero
        wg = jnp.zeros((16, w.shape[1]), w.dtype).at[0:6].set(w[0:6]).at[8:14].set(w[6:12])
        bg = jnp.zeros((16, 1), b.dtype).at[0:6].set(b[0:6]).at[8:14].set(b[6:12])
        return wg, bg

    w13g, b13g = gap_rows(p["w13"], p["b13"])
    w22g, b22g = gap_rows(p["w22"], p["b22"])
    w21p = jnp.zeros((20, 8), p["w21"].dtype).at[:, 0:6].set(p["w21"])      # gapped latent input
    wfg = (jnp.zeros((12, 16), p["wf"].dtype)
           .at[:, 0:6].set(p["wf"][:, 0:6]).at[:, 8:14].set(p["wf"][:, 6:12]))

    return {
        "w11": p["w11"].astype(bf16), "b11": p["b11"],
        "w12": p["w12"].astype(bf16), "b12": p["b12"],
        "w13": w13g.astype(bf16),     "b13": b13g,
        "w21": w21p.astype(bf16),     "b21": p["b21"],
        "w22": w22g.astype(bf16),     "b22": b22g,
        "wf":  wfg.astype(bf16),      "bf":  p["bf"],
    }


# ---------------- forward wrapper (jitted: pad/transpose glue fuses with the launch) ----------------

@functools.partial(jax.jit, static_argnames=("step",))
def vae_forward(packed, x, eps, *, step):
    B, T, F = x.shape
    if F != 12 or T != step:
        raise ValueError("module semantics require x: (B, step, 12)")
    if B <= step:
        raise ValueError("need B > step so the sliding window is non-empty")
    bp = 128 * pl.cdiv(B, 128)      # lane-padded batch
    f32 = jnp.float32

    # feature-major, lane-dense layout: column t*bp + b  <->  x[b, t, :]
    x_t = (jnp.zeros((12, T, bp), f32)
           .at[:, :, :B].set(jnp.transpose(x.astype(f32), (2, 1, 0)))
           .reshape(12, T * bp))
    eps8 = jnp.zeros((8, bp), f32).at[:6, :B].set(eps.astype(f32).T)

    kernel = functools.partial(vae_fused_kernel, B=B, step=step, bp=bp)
    vmem = lambda: pl.BlockSpec(memory_space=pltpu.MemorySpace.VMEM)

    out_t, kld = pl.pallas_call(
        kernel,
        out_shape=(jax.ShapeDtypeStruct((12, T * bp), f32),
                   jax.ShapeDtypeStruct((1, 1), f32)),
        in_specs=[vmem() for _ in range(14)],
        out_specs=(vmem(), vmem()),
    )(x_t, eps8,
      packed["w11"], packed["b11"], packed["w12"], packed["b12"],
      packed["w13"], packed["b13"], packed["w21"], packed["b21"],
      packed["w22"], packed["b22"], packed["wf"], packed["bf"])

    out = jnp.transpose(out_t.reshape(12, T, bp)[:, :, :B - step], (2, 1, 0))
    return out, kld[0, 0]


# ---------------- pure-JAX f32 reference (for correctness check) ----------------

def vae_reference(params, x, step, eps):
    B, T, F = x.shape
    lin = lambda v, w, b: v @ w.T + b[:, 0]
    lr = lambda v: jnp.where(v > 0, v, LEAK * v)
    e = lr(lin(x.astype(jnp.float32), params["w11"], params["b11"]))
    e = lr(lin(e, params["w12"], params["b12"]))
    e = lr(lin(e, params["w13"], params["b13"]))                  # (B, T, 12)
    h_last = e[:, -1, :]
    mu, sigma = h_last[:, :6], h_last[:, 6:]
    h = mu + sigma * eps
    idx = jnp.arange(B - step)[:, None] + jnp.arange(step)[None, :]
    hw = h[idx]                                                   # (B-step, step, 6)
    d = lr(lin(hw, params["w21"], params["b21"]))
    d = lr(lin(d, params["w22"], params["b22"]))
    d = d + e[step:, :, :]
    out = jax.nn.sigmoid(lin(d, params["wf"], params["bf"]))
    s2 = sigma * sigma
    kld = 0.5 * jnp.sum(mu * mu + s2 - jnp.log(1e-8 + s2) - 1.0) / B
    return out, kld


if __name__ == "__main__":
    step = 4
    B, T, F = 8, 4, 12   # x: (batch, step, 12); module requires seq == step

    root = jax.random.PRNGKey(0)
    k_param, k_x, k_noise = jax.random.split(root, 3)

    params = init_params(k_param)
    packed = pack_params(params)
    x = jax.random.normal(k_x, (B, T, F), jnp.float32)
    eps = jax.random.normal(k_noise, (B, 6), jnp.float32)

    out, kld = vae_forward(packed, x, eps, step=step)
    out = jax.block_until_ready(out)
    kld = jax.block_until_ready(kld)

    assert out.shape == (B - step, step, 12)
    assert out.dtype == jnp.float32
    assert kld.shape == ()

    ref_out, ref_kld = vae_reference(params, x, step, eps)
    # bf16 MXU operands (f32 accumulate) vs pure-f32 reference -> small rounding;
    # the KLD log term is extra sensitive when sigma is near zero, hence the looser atol.
    assert jnp.allclose(out, ref_out, atol=3e-2), "output mismatch vs reference"
    assert jnp.allclose(kld, ref_kld, rtol=5e-2, atol=1e-1), "kld mismatch vs reference"

    print("KERNEL_OK")
</pallas_src>

<mosaic_0001>
module attributes {stable_mosaic.version = 11 : i64} {
  func.func @vae_fused_kernel(%arg0: memref<12x512xf32, #tpu.memory_space<vmem>>, %arg1: memref<8x128xf32, #tpu.memory_space<vmem>>, %arg2: memref<20x12xbf16, #tpu.memory_space<vmem>>, %arg3: memref<20x1xf32, #tpu.memory_space<vmem>>, %arg4: memref<20x20xbf16, #tpu.memory_space<vmem>>, %arg5: memref<20x1xf32, #tpu.memory_space<vmem>>, %arg6: memref<16x20xbf16, #tpu.memory_space<vmem>>, %arg7: memref<16x1xf32, #tpu.memory_space<vmem>>, %arg8: memref<20x8xbf16, #tpu.memory_space<vmem>>, %arg9: memref<20x1xf32, #tpu.memory_space<vmem>>, %arg10: memref<16x20xbf16, #tpu.memory_space<vmem>>, %arg11: memref<16x1xf32, #tpu.memory_space<vmem>>, %arg12: memref<12x16xbf16, #tpu.memory_space<vmem>>, %arg13: memref<12x1xf32, #tpu.memory_space<vmem>>, %arg14: memref<12x512xf32, #tpu.memory_space<vmem>>, %arg15: memref<1x1xf32, #tpu.memory_space<vmem>>) attributes {dimension_semantics = [], scalar_prefetch = 0 : i64, scratch_operands = 0 : i64, tpu.core_type = #tpu.core_type<tc>} {
    %c0 = arith.constant 0 : index
    %c0_0 = arith.constant 0 : index
    %0 = vector.load %arg0[%c0, %c0_0] : memref<12x512xf32, #tpu.memory_space<vmem>>, vector<12x512xf32>
    %c0_1 = arith.constant 0 : index
    %c0_2 = arith.constant 0 : index
    %1 = vector.load %arg2[%c0_1, %c0_2] : memref<20x12xbf16, #tpu.memory_space<vmem>>, vector<20x12xbf16>
    %2 = arith.truncf %0 : vector<12x512xf32> to vector<12x512xbf16>
    %cst = arith.constant dense<0.000000e+00> : vector<20x512xf32>
    %3 = tpu.matmul %1, %2, %cst {dimension_numbers = #tpu.dot_dimension_numbers<[1], [0], [0], [1], [0, 0, 1, 1], [], []>} : vector<20x12xbf16>, vector<12x512xbf16>, vector<20x512xf32> -> vector<20x512xf32>
    %c0_3 = arith.constant 0 : index
    %c0_4 = arith.constant 0 : index
    %4 = vector.load %arg3[%c0_3, %c0_4] : memref<20x1xf32, #tpu.memory_space<vmem>>, vector<20x1xf32>
    %5 = vector.broadcast %4 : vector<20x1xf32> to vector<20x512xf32>
    %6 = arith.addf %3, %5 : vector<20x512xf32>
    %cst_5 = arith.constant 0.000000e+00 : f32
    %7 = vector.broadcast %cst_5 : f32 to vector<20x512xf32>
    %8 = arith.cmpf ogt, %6, %7 : vector<20x512xf32>
    %cst_6 = arith.constant 5.000000e-01 : f32
    %9 = vector.broadcast %cst_6 : f32 to vector<20x512xf32>
    %10 = arith.mulf %9, %6 : vector<20x512xf32>
    %11 = arith.select %8, %6, %10 : vector<20x512xi1>, vector<20x512xf32>
    %c0_7 = arith.constant 0 : index
    %c0_8 = arith.constant 0 : index
    %12 = vector.load %arg4[%c0_7, %c0_8] : memref<20x20xbf16, #tpu.memory_space<vmem>>, vector<20x20xbf16>
    %13 = arith.truncf %11 : vector<20x512xf32> to vector<20x512xbf16>
    %cst_9 = arith.constant dense<0.000000e+00> : vector<20x512xf32>
    %14 = tpu.matmul %12, %13, %cst_9 {dimension_numbers = #tpu.dot_dimension_numbers<[1], [0], [0], [1], [0, 0, 1, 1], [], []>} : vector<20x20xbf16>, vector<20x512xbf16>, vector<20x512xf32> -> vector<20x512xf32>
    %c0_10 = arith.constant 0 : index
    %c0_11 = arith.constant 0 : index
    %15 = vector.load %arg5[%c0_10, %c0_11] : memref<20x1xf32, #tpu.memory_space<vmem>>, vector<20x1xf32>
    %16 = vector.broadcast %15 : vector<20x1xf32> to vector<20x512xf32>
    %17 = arith.addf %14, %16 : vector<20x512xf32>
    %cst_12 = arith.constant 0.000000e+00 : f32
    %18 = vector.broadcast %cst_12 : f32 to vector<20x512xf32>
    %19 = arith.cmpf ogt, %17, %18 : vector<20x512xf32>
    %cst_13 = arith.constant 5.000000e-01 : f32
    %20 = vector.broadcast %cst_13 : f32 to vector<20x512xf32>
    %21 = arith.mulf %20, %17 : vector<20x512xf32>
    %22 = arith.select %19, %17, %21 : vector<20x512xi1>, vector<20x512xf32>
    %c0_14 = arith.constant 0 : index
    %c0_15 = arith.constant 0 : index
    %23 = vector.load %arg6[%c0_14, %c0_15] : memref<16x20xbf16, #tpu.memory_space<vmem>>, vector<16x20xbf16>
    %24 = arith.truncf %22 : vector<20x512xf32> to vector<20x512xbf16>
    %cst_16 = arith.constant dense<0.000000e+00> : vector<16x512xf32>
    %25 = tpu.matmul %23, %24, %cst_16 {dimension_numbers = #tpu.dot_dimension_numbers<[1], [0], [0], [1], [0, 0, 1, 1], [], []>} : vector<16x20xbf16>, vector<20x512xbf16>, vector<16x512xf32> -> vector<16x512xf32>
    %c0_17 = arith.constant 0 : index
    %c0_18 = arith.constant 0 : index
    %26 = vector.load %arg7[%c0_17, %c0_18] : memref<16x1xf32, #tpu.memory_space<vmem>>, vector<16x1xf32>
    %27 = vector.broadcast %26 : vector<16x1xf32> to vector<16x512xf32>
    %28 = arith.addf %25, %27 : vector<16x512xf32>
    %cst_19 = arith.constant 0.000000e+00 : f32
    %29 = vector.broadcast %cst_19 : f32 to vector<16x512xf32>
    %30 = arith.cmpf ogt, %28, %29 : vector<16x512xf32>
    %cst_20 = arith.constant 5.000000e-01 : f32
    %31 = vector.broadcast %cst_20 : f32 to vector<16x512xf32>
    %32 = arith.mulf %31, %28 : vector<16x512xf32>
    %33 = arith.select %30, %28, %32 : vector<16x512xi1>, vector<16x512xf32>
    %34 = vector.extract_strided_slice %33 {offsets = [0, 384], sizes = [16, 128], strides = [1, 1]} : vector<16x512xf32> to vector<16x128xf32>
    %35 = vector.extract_strided_slice %34 {offsets = [0, 0], sizes = [8, 128], strides = [1, 1]} : vector<16x128xf32> to vector<8x128xf32>
    %36 = vector.extract_strided_slice %34 {offsets = [8, 0], sizes = [8, 128], strides = [1, 1]} : vector<16x128xf32> to vector<8x128xf32>
    %c0_21 = arith.constant 0 : index
    %c0_22 = arith.constant 0 : index
    %37 = vector.load %arg1[%c0_21, %c0_22] : memref<8x128xf32, #tpu.memory_space<vmem>>, vector<8x128xf32>
    %38 = arith.mulf %36, %37 : vector<8x128xf32>
    %39 = arith.addf %35, %38 : vector<8x128xf32>
    %c0_23 = arith.constant 0 : index
    %c0_24 = arith.constant 0 : index
    %40 = vector.load %arg8[%c0_23, %c0_24] : memref<20x8xbf16, #tpu.memory_space<vmem>>, vector<20x8xbf16>
    %41 = arith.truncf %39 : vector<8x128xf32> to vector<8x128xbf16>
    %cst_25 = arith.constant dense<0.000000e+00> : vector<20x128xf32>
    %42 = tpu.matmul %40, %41, %cst_25 {dimension_numbers = #tpu.dot_dimension_numbers<[1], [0], [0], [1], [0, 0, 1, 1], [], []>} : vector<20x8xbf16>, vector<8x128xbf16>, vector<20x128xf32> -> vector<20x128xf32>
    %c0_26 = arith.constant 0 : index
    %c0_27 = arith.constant 0 : index
    %43 = vector.load %arg9[%c0_26, %c0_27] : memref<20x1xf32, #tpu.memory_space<vmem>>, vector<20x1xf32>
    %44 = vector.broadcast %43 : vector<20x1xf32> to vector<20x128xf32>
    %45 = arith.addf %42, %44 : vector<20x128xf32>
    %cst_28 = arith.constant 0.000000e+00 : f32
    %46 = vector.broadcast %cst_28 : f32 to vector<20x128xf32>
    %47 = arith.cmpf ogt, %45, %46 : vector<20x128xf32>
    %cst_29 = arith.constant 5.000000e-01 : f32
    %48 = vector.broadcast %cst_29 : f32 to vector<20x128xf32>
    %49 = arith.mulf %48, %45 : vector<20x128xf32>
    %50 = arith.select %47, %45, %49 : vector<20x128xi1>, vector<20x128xf32>
    %c0_30 = arith.constant 0 : index
    %c0_31 = arith.constant 0 : index
    %51 = vector.load %arg10[%c0_30, %c0_31] : memref<16x20xbf16, #tpu.memory_space<vmem>>, vector<16x20xbf16>
    %52 = arith.truncf %50 : vector<20x128xf32> to vector<20x128xbf16>
    %cst_32 = arith.constant dense<0.000000e+00> : vector<16x128xf32>
    %53 = tpu.matmul %51, %52, %cst_32 {dimension_numbers = #tpu.dot_dimension_numbers<[1], [0], [0], [1], [0, 0, 1, 1], [], []>} : vector<16x20xbf16>, vector<20x128xbf16>, vector<16x128xf32> -> vector<16x128xf32>
    %c0_33 = arith.constant 0 : index
    %c0_34 = arith.constant 0 : index
    %54 = vector.load %arg11[%c0_33, %c0_34] : memref<16x1xf32, #tpu.memory_space<vmem>>, vector<16x1xf32>
    %55 = vector.broadcast %54 : vector<16x1xf32> to vector<16x128xf32>
    %56 = arith.addf %53, %55 : vector<16x128xf32>
    %cst_35 = arith.constant 0.000000e+00 : f32
    %57 = vector.broadcast %cst_35 : f32 to vector<16x128xf32>
    %58 = arith.cmpf ogt, %56, %57 : vector<16x128xf32>
    %cst_36 = arith.constant 5.000000e-01 : f32
    %59 = vector.broadcast %cst_36 : f32 to vector<16x128xf32>
    %60 = arith.mulf %59, %56 : vector<16x128xf32>
    %61 = arith.select %58, %56, %60 : vector<16x128xi1>, vector<16x128xf32>
    %62 = vector.extract_strided_slice %33 {offsets = [0, 0], sizes = [16, 128], strides = [1, 1]} : vector<16x512xf32> to vector<16x128xf32>
    %c124_i32 = arith.constant 124 : i32
    %63 = tpu.dynamic_rotate %62 by %c124_i32 dim 1 : vector<16x128xf32>, i32 -> vector<16x128xf32>
    %64 = arith.addf %61, %63 : vector<16x128xf32>
    %c127_i32 = arith.constant 127 : i32
    %65 = tpu.dynamic_rotate %61 by %c127_i32 dim 1 : vector<16x128xf32>, i32 -> vector<16x128xf32>
    %66 = vector.extract_strided_slice %33 {offsets = [0, 128], sizes = [16, 128], strides = [1, 1]} : vector<16x512xf32> to vector<16x128xf32>
    %c124_i32_37 = arith.constant 124 : i32
    %67 = tpu.dynamic_rotate %66 by %c124_i32_37 dim 1 : vector<16x128xf32>, i32 -> vector<16x128xf32>
    %68 = arith.addf %65, %67 : vector<16x128xf32>
    %c126_i32 = arith.constant 126 : i32
    %69 = tpu.dynamic_rotate %61 by %c126_i32 dim 1 : vector<16x128xf32>, i32 -> vector<16x128xf32>
    %70 = vector.extract_strided_slice %33 {offsets = [0, 256], sizes = [16, 128], strides = [1, 1]} : vector<16x512xf32> to vector<16x128xf32>
    %c124_i32_38 = arith.constant 124 : i32
    %71 = tpu.dynamic_rotate %70 by %c124_i32_38 dim 1 : vector<16x128xf32>, i32 -> vector<16x128xf32>
    %72 = arith.addf %69, %71 : vector<16x128xf32>
    %c125_i32 = arith.constant 125 : i32
    %73 = tpu.dynamic_rotate %61 by %c125_i32 dim 1 : vector<16x128xf32>, i32 -> vector<16x128xf32>
    %74 = vector.extract_strided_slice %33 {offsets = [0, 384], sizes = [16, 128], strides = [1, 1]} : vector<16x512xf32> to vector<16x128xf32>
    %c124_i32_39 = arith.constant 124 : i32
    %75 = tpu.dynamic_rotate %74 by %c124_i32_39 dim 1 : vector<16x128xf32>, i32 -> vector<16x128xf32>
    %76 = arith.addf %73, %75 : vector<16x128xf32>
    %77 = tpu.concatenate %64, %68, %72, %76 in 1 : vector<16x128xf32>, vector<16x128xf32>, vector<16x128xf32>, vector<16x128xf32> -> vector<16x512xf32>
    %c0_40 = arith.constant 0 : index
    %c0_41 = arith.constant 0 : index
    %78 = vector.load %arg12[%c0_40, %c0_41] : memref<12x16xbf16, #tpu.memory_space<vmem>>, vector<12x16xbf16>
    %79 = arith.truncf %77 : vector<16x512xf32> to vector<16x512xbf16>
    %cst_42 = arith.constant dense<0.000000e+00> : vector<12x512xf32>
    %80 = tpu.matmul %78, %79, %cst_42 {dimension_numbers = #tpu.dot_dimension_numbers<[1], [0], [0], [1], [0, 0, 1, 1], [], []>} : vector<12x16xbf16>, vector<16x512xbf16>, vector<12x512xf32> -> vector<12x512xf32>
    %c0_43 = arith.constant 0 : index
    %c0_44 = arith.constant 0 : index
    %81 = vector.load %arg13[%c0_43, %c0_44] : memref<12x1xf32, #tpu.memory_space<vmem>>, vector<12x1xf32>
    %82 = vector.broadcast %81 : vector<12x1xf32> to vector<12x512xf32>
    %83 = arith.addf %80, %82 : vector<12x512xf32>
    %84 = arith.negf %83 : vector<12x512xf32>
    %85 = math.exp %84 : vector<12x512xf32>
    %cst_45 = arith.constant 1.000000e+00 : f32
    %86 = vector.broadcast %cst_45 : f32 to vector<12x512xf32>
    %87 = arith.addf %86, %85 : vector<12x512xf32>
    %88 = arith.divf %86, %87 : vector<12x512xf32>
    %c0_46 = arith.constant 0 : index
    %c0_47 = arith.constant 0 : index
    %89 = vector.load %arg14[%c0_46, %c0_47] : memref<12x512xf32, #tpu.memory_space<vmem>>, vector<12x512xf32>
    tpu.vector_store %arg14[%c0_46, %c0_47], %88 {strides = array<i32>} : memref<12x512xf32, #tpu.memory_space<vmem>>, vector<12x512xf32>,
    %90 = tpu.iota {dimensions = array<i32: 0>} : vector<8x128xi32>
    %91 = tpu.iota {dimensions = array<i32: 1>} : vector<8x128xi32>
    %92 = arith.mulf %36, %36 : vector<8x128xf32>
    %93 = arith.mulf %35, %35 : vector<8x128xf32>
    %94 = arith.addf %93, %92 : vector<8x128xf32>
    %cst_48 = arith.constant 9.99999993E-9 : f32
    %95 = vector.broadcast %cst_48 : f32 to vector<8x128xf32>
    %96 = arith.addf %95, %92 : vector<8x128xf32>
    %97 = math.log %96 : vector<8x128xf32>
    %98 = arith.subf %94, %97 : vector<8x128xf32>
    %cst_49 = arith.constant 1.000000e+00 : f32
    %99 = vector.broadcast %cst_49 : f32 to vector<8x128xf32>
    %100 = arith.subf %98, %99 : vector<8x128xf32>
    %c6_i32 = arith.constant 6 : i32
    %101 = vector.broadcast %c6_i32 : i32 to vector<8x128xi32>
    %102 = arith.cmpi slt, %90, %101 : vector<8x128xi32>
    %c8_i32 = arith.constant 8 : i32
    %103 = vector.broadcast %c8_i32 : i32 to vector<8x128xi32>
    %104 = arith.cmpi slt, %91, %103 : vector<8x128xi32>
    %105 = arith.andi %102, %104 : vector<8x128xi1>
    %cst_50 = arith.constant 0.000000e+00 : f32
    %106 = vector.broadcast %cst_50 : f32 to vector<8x128xf32>
    %107 = arith.select %105, %100, %106 : vector<8x128xi1>, vector<8x128xf32>
    %108 = vector.shape_cast %107 : vector<8x128xf32> to vector<1x8x128xf32>
    %cst_51 = arith.constant dense<0.000000e+00> : vector<1xf32>
    %109 = vector.multi_reduction <add>, %108, %cst_51 [1, 2] : vector<1x8x128xf32> to vector<1xf32>
    %110 = vector.shape_cast %109 : vector<1xf32> to vector<1x1x1xf32>
    %111 = vector.extract %110[0, 0, 0] : f32 from vector<1x1x1xf32>
    %112 = vector.broadcast %111 : f32 to vector<1x1xf32>
    %cst_52 = arith.constant 5.000000e-01 : f32
    %113 = vector.broadcast %cst_52 : f32 to vector<1x1xf32>
    %114 = arith.mulf %113, %112 : vector<1x1xf32>
    %cst_53 = arith.constant 8.000000e+00 : f32
    %115 = vector.broadcast %cst_53 : f32 to vector<1x1xf32>
    %116 = arith.divf %114, %115 : vector<1x1xf32>
    %c0_54 = arith.constant 0 : index
    %c0_55 = arith.constant 0 : index
    %117 = vector.load %arg15[%c0_54, %c0_55] : memref<1x1xf32, #tpu.memory_space<vmem>>, vector<1x1xf32>
    tpu.vector_store %arg15[%c0_54, %c0_55], %116 {strides = array<i32>} : memref<1x1xf32, #tpu.memory_space<vmem>>, vector<1x1xf32>,
    return
  }
}

</mosaic_0001>

<bundles_post_ra>
// kernel: vae_forward.1
= control target key start
LH: loop header
LB: loop body
LE: loop exit
PB: predicated region body
PF: predicated region fallthrough
CT: control target
= control target key end

     0   :  { %vm99_vm0 = vcmask 1045504   ;;  %v1101_v3 = vmov 0   ;;  %vm92_vm1 = vcmask 97280   ;;  %s1433_s0 = inlined_call_operand.vmem [shape: f32[12,512], index: 0, kind: input, shape index: {}]   ;;  %s1434_s1 = inlined_call_operand.vmem [shape: f32[8,128], index: 1, kind: input, shape index: {}]   ;;  %s1435_s2 = inlined_call_operand.vmem [shape: bf16[20,12], index: 2, kind: input, shape index: {}]   ;;  %s1436_s3 = inlined_call_operand.vmem [shape: f32[20,1], index: 3, kind: input, shape index: {}]   ;;  %s1437_s4 = inlined_call_operand.vmem [shape: bf16[20,20], index: 4, kind: input, shape index: {}]   ;;  %s1438_s5 = inlined_call_operand.vmem [shape: f32[20,1], index: 5, kind: input, shape index: {}]   ;;  %s1439_s6 = inlined_call_operand.vmem [shape: bf16[16,20], index: 6, kind: input, shape index: {}]   ;;  %s1440_s7 = inlined_call_operand.vmem [shape: f32[16,1], index: 7, kind: input, shape index: {}]   ;;  %s1441_s8 = inlined_call_operand.vmem [shape: bf16[20,8], index: 8, kind: input, shape index: {}]   ;;  %s1442_s9 = inlined_call_operand.vmem [shape: f32[20,1], index: 9, kind: input, shape index: {}]   ;;  %s1443_s10 = inlined_call_operand.vmem [shape: bf16[16,20], index: 10, kind: input, shape index: {}]   ;;  %s1444_s11 = inlined_call_operand.vmem [shape: f32[16,1], index: 11, kind: input, shape index: {}]   ;;  %s1445_s12 = inlined_call_operand.vmem [shape: bf16[12,16], index: 12, kind: input, shape index: {}]   ;;  %s1446_s13 = inlined_call_operand.vmem [shape: f32[12,1], index: 13, kind: input, shape index: {}]   ;;  %s1447_s14 = inlined_call_operand.vmem [shape: f32[12,512], index: 14, kind: output, shape index: {0}]   ;;  %s1448_s15 = inlined_call_operand.hbm [shape: f32[1,1], index: 15, kind: output, shape index: {1}]  }
   0x1   :  { %v51_v0 = vld [vmem:[%s1433_s0] sm:$0xff]  ;;  %v52_v2 = vld [vmem:[%s1433_s0 + $0x8] sm:$0xff]  ;;  %1036 = vset.pattern.permute.xlu0 %v1101_v3  ;;  %v53_v6 = vld [vmem:[%s1433_s0 + $0x10] sm:$0xff]  ;;  %1037 = vset.pattern.permute.xlu1 %v1101_v3 }
   0x2   :  { %v55_v1 = vld [vmem:[%s1433_s0 + $0x20] sm:$0xf]  ;;  %v56_v5 = vld [vmem:[%s1433_s0 + $0x28] sm:$0xf]  ;;  %v57_v7 = vld [vmem:[%s1433_s0 + $0x30] sm:$0xf]  ;;  %1038 = vset.pattern.permute.xlu2 %v1101_v3 }
   0x3   :  { %v62_v4 = vpack.c.bf16 %v55_v1, %v51_v0  ;;  %v63_v8 = vpack.c.bf16 %v56_v5, %v52_v2  ;;  %v64_v9 = vpack.c.bf16 %v57_v7, %v53_v6  ;;  %v54_v10 = vld [vmem:[%s1433_s0 + $0x18] sm:$0xff]  ;;  %v68_v12 = vld [vmem:[%s1436_s3 + $0x10] sm:$0xf]  ;;  %v1021_v15 = vld [vmem:[%s1435_s2] sm:$0xff] }
   0x4   :  { %v58_v11 = vld [vmem:[%s1433_s0 + $0x38] sm:$0xf]  ;;  %81 = vperm.xlu0 %1036, %v68_v12   ;;  %v67_v16 = vld [vmem:[%s1436_s3 + $0x8] sm:$0xff] }
   0x5   :  { %v101_v13 = vsel %vm99_vm0, %v62_v4, 0  ;;  %v65_v14 = vpack.c.bf16 %v58_v11, %v54_v10  ;;  %v104_v17 = vsel %vm99_vm0, %v63_v8, 0  ;;  %v107_v18 = vsel %vm99_vm0, %v64_v9, 0  ;;  %76 = vperm.xlu1 %1037, %v67_v16  }
   0x6   :  { %119 = vmatpush.bf16.msra.mxu0 %v101_v13  ;;  %137 = vmatpush.bf16.msra.mxu1 %v104_v17 }
   0x7   :  { %155 = vmatpush.bf16.msra.mxu2 %v107_v18  ;;  %v110_v19 = vsel %vm99_vm0, %v65_v14, 0 }
   0x8   :  { %173 = vmatpush.bf16.msra.mxu3 %v110_v19 }
   0x9   :  { %21 = vsyncpa [#allocation3], 0  ;;  %965 = vmatmul.msk.bf16.vlgmr.msra.gmra.mxu0 %vm92_vm1, %v1021_v15  ;;  %967 = vmatmul.msk.bf16.vlgmr.msra.gmra.mxu1 %vm92_vm1, %v1021_v15  ;;  %v66_v20 = vld [vmem:[%s1436_s3] sm:$0xff]  ;;  %v233_v21 = vld [vmem:[%s1438_s5 + $0x10] sm:$0xf]  ;;  %vm264_vm6 = vcmask 1041408  }
   0xa   :  { %969 = vmatmul.msk.bf16.vlgmr.msra.gmra.mxu2 %vm92_vm1, %v1021_v15  ;;  %v61_v22 = vld [vmem:[%s1435_s2 + $0x8] sm:$0x3]  ;;  %v395_v25 = vld [vmem:[%s1440_s7] sm:$0xff]  ;;  %vm257_vm13 = vcmask 162816   ;;  %s1103_s20 = smov 127   ;;  %s1105_s21 = smov 125  }
   0xb   :  { %971 = vmatmul.msk.bf16.vlgmr.msra.gmra.mxu3 %vm92_vm1, %v1021_v15  ;;  %v89_v23 = vunpack.c.l.b16 %v61_v22  ;;  %v396_v24 = vld [vmem:[%s1440_s7 + $0x8] sm:$0xff]  ;;  %v514_v27 = vld [vmem:[%s1442_s9] sm:$0xff]  ;;  %s1104_s7 = smov 126   ;;  %s1107_s30 = smov [#allocation2]  }
   0xc   :  { %71 = vperm.xlu0 %1036, %v66_v20   ;;  %v515_v28 = vld [vmem:[%s1442_s9 + $0x8] sm:$0xff]  ;;  %v231_v5 = vld [vmem:[%s1438_s5] sm:$0xff]  ;;  %s948_s16 = sshll.u32 %s1107_s30, 4  ;;  %s949_s16 = int_to_ptr.vmem [resolvable:$true] %s948_s16 }
   0xd   :  { %246 = vperm.xlu1 %1037, %v233_v21   ;;  %v91_v26 = vpack.c.b16 %v89_v23, %v89_v23  ;;  %v583_v29 = vld [vmem:[%s1444_s11 + $0x8] sm:$0xff]  ;;  %236 = vperm.xlu2 %1038, %v231_v5   ;;  %v1022_v20 = vld [vmem:[%s1437_s4] sm:$0xff] }
  0x14   :  { %404 = vperm.xlu0 %1036, %v396_v24  }
  0x15   :  { %399 = vperm.xlu1 %1037, %v395_v25  }
  0x19   :  { %966 = vmatmul.msk.bf16.gmra.mxu0 %vm92_vm1, %v91_v26  ;;  %968 = vmatmul.msk.bf16.gmra.mxu1 %vm92_vm1, %v91_v26 }
  0x1a   :  { %970 = vmatmul.msk.bf16.gmra.mxu2 %vm92_vm1, %v91_v26 }
  0x1b   :  { %972 = vmatmul.msk.bf16.gmra.mxu3 %vm92_vm1, %v91_v26 }
  0x1c   :  { %519 = vperm.xlu0 %1036, %v514_v27  }
  0x1d   :  { %524 = vperm.xlu1 %1037, %v515_v28   ;;  %v232_v28 = vld [vmem:[%s1438_s5 + $0x8] sm:$0xff] }
  0x1e   :  { %241 = vperm.xlu2 %1038, %v232_v28  }
  0x24   :  { %591 = vperm.xlu0 %1036, %v583_v29  }
  0x76   :  { %v82_v32 = vpop.permute.xlu0 %81 }
  0x77   :  { %v77_v40 = vpop.permute.xlu1 %76 }
  0x7e   :  { %v72_v37 = vpop.permute.xlu0 %71 }
  0x86   :  { %v121_v30 = vpop.f32.mrf.mxu0  ;;  %v139_v31 = vpop.f32.mrf.mxu1 }
  0x87   :  { %v122_v38 = vadd.f32 %v121_v30, %v72_v37  ;;  %v140_v39 = vadd.f32 %v139_v31, %v72_v37 }
  0x89   :  { %v196_v48 = vmul.f32 0.5, %v122_v38  ;;  %v197_v50 = vmul.f32 0.5, %v140_v39  ;;  %vm184_vm3 = vcmp.gt.f32.partialorder %v122_v38, 0.0  ;;  %vm185_vm5 = vcmp.gt.f32.partialorder %v140_v39, 0.0 }
  0x8b   :  { %v208_v62 = vsel %vm184_vm3, %v122_v38, %v196_v48  ;;  %v209_v63 = vsel %vm185_vm5, %v140_v39, %v197_v50 }
  0x8d   :  { %v157_v33 = vpop.f32.mrf.mxu2 }
  0x8e   :  { %v175_v34 = vpop.f32.mrf.mxu3  ;;  %v123_v35 = vpop.f32.mrf.mxu0  ;;  %v158_v56 = vadd.f32 %v157_v33, %v72_v37 }
  0x8f   :  { %v141_v36 = vpop.f32.mrf.mxu1  ;;  %v124_v42 = vadd.f32 %v123_v35, %v77_v40  ;;  %v176_v7 = vadd.f32 %v175_v34, %v72_v37  ;;  %v516_v37 = vld [vmem:[%s1442_s9 + $0x10] sm:$0xf] }
  0x90   :  { %v142_v45 = vadd.f32 %v141_v36, %v77_v40  ;;  %v198_v12 = vmul.f32 0.5, %v158_v56  ;;  %vm186_vm10 = vcmp.gt.f32.partialorder %v158_v56, 0.0  ;;  %v222_v36 = vld [vmem:[%s1437_s4 + $0x8] sm:$0x3]  ;;  %529 = vperm.xlu2 %1038, %v516_v37  }
  0x91   :  { %v200_v52 = vmul.f32 0.5, %v124_v42  ;;  %vm188_vm7 = vcmp.gt.f32.partialorder %v124_v42, 0.0  ;;  %v199_v23 = vmul.f32 0.5, %v176_v7  ;;  %vm187_vm15 = vcmp.gt.f32.partialorder %v176_v7, 0.0 }
  0x92   :  { %v201_v54 = vmul.f32 0.5, %v142_v45  ;;  %vm189_vm8 = vcmp.gt.f32.partialorder %v142_v45, 0.0  ;;  %v210_v26 = vsel %vm186_vm10, %v158_v56, %v198_v12  ;;  %v254_v38 = vunpack.c.l.b16 %v222_v36 }
  0x93   :  { %v212_v4 = vsel %vm188_vm7, %v124_v42, %v200_v52  ;;  %v211_v34 = vsel %vm187_vm15, %v176_v7, %v199_v23 }
  0x94   :  { %v213_v10 = vsel %vm189_vm8, %v142_v45, %v201_v54  ;;  %v223_v16 = vpack.c.bf16 %v212_v4, %v208_v62  ;;  %v256_v39 = vpack.c.b16 %v254_v38, %v254_v38 }
  0x95   :  { %v159_v41 = vpop.f32.mrf.mxu2  ;;  %v224_v18 = vpack.c.bf16 %v213_v10, %v209_v63 }
  0x96   :  { %v177_v43 = vpop.f32.mrf.mxu3  ;;  %v126_v44 = vpop.f32.mrf.mxu0  ;;  %v160_v59 = vadd.f32 %v159_v41, %v77_v40 }
  0x97   :  { %v127_v46 = vadd.f32 %v126_v44, %v82_v32  ;;  %v144_v47 = vpop.f32.mrf.mxu1  ;;  %v178_v0 = vadd.f32 %v177_v43, %v77_v40  ;;  %v582_v40 = vld [vmem:[%s1444_s11] sm:$0xff]  ;;  %v237_v43 = vpop.permute.xlu2 %236 }
  0x98   :  { %v145_v49 = vadd.f32 %v144_v47, %v82_v32  ;;  %v202_v14 = vmul.f32 0.5, %v160_v59  ;;  %vm190_vm12 = vcmp.gt.f32.partialorder %v160_v59, 0.0  ;;  %586 = vperm.xlu2 %1038, %v582_v40  }
  0x99   :  { %v204_v51 = vmul.f32 0.5, %v127_v46  ;;  %vm192_vm2 = vcmp.gt.f32.partialorder %v127_v46, 0.0  ;;  %v203_v17 = vmul.f32 0.5, %v178_v0  ;;  %vm191_vm14 = vcmp.gt.f32.partialorder %v178_v0, 0.0 }
  0x9a   :  { %v205_v53 = vmul.f32 0.5, %v145_v49  ;;  %vm193_vm4 = vcmp.gt.f32.partialorder %v145_v49, 0.0  ;;  %v214_v27 = vsel %vm190_vm12, %v160_v59, %v202_v14 }
  0x9b   :  { %v216_v55 = vsel %vm192_vm2, %v127_v46, %v204_v51  ;;  %v225_v33 = vpack.c.bf16 %v214_v27, %v210_v26 }
  0x9c   :  { %v227_v57 = vpack.c.bf16 %v216_v55, %v216_v55  ;;  %v217_v58 = vsel %vm193_vm4, %v145_v49, %v205_v53  ;;  %v247_v53 = vpop.permute.xlu1 %246 }
  0x9d   :  { %v162_v60 = vpop.f32.mrf.mxu2  ;;  %v228_v61 = vpack.c.bf16 %v217_v58, %v217_v58 }
  0x9e   :  { %v163_v1 = vadd.f32 %v162_v60, %v82_v32  ;;  %v180_v2 = vpop.f32.mrf.mxu3  ;;  %v266_v3 = vsel %vm264_vm6, %v227_v57, 0  ;;  %v128_v6 = vpop.f32.mrf.mxu0 }
  0x9f   :  { %v181_v8 = vadd.f32 %v180_v2, %v82_v32  ;;  %283 = vmatpush.bf16.msrb.mxu0 %v266_v3  ;;  %v269_v9 = vsel %vm264_vm6, %v228_v61, 0  ;;  %v146_v11 = vpop.f32.mrf.mxu1  ;;  %v215_v32 = vsel %vm191_vm14, %v178_v0, %v203_v17  ;;  %v242_v48 = vpop.permute.xlu2 %241 }
  0xa0   :  { %v206_v13 = vmul.f32 0.5, %v163_v1  ;;  %301 = vmatpush.bf16.msrb.mxu1 %v269_v9  ;;  %vm194_vm9 = vcmp.gt.f32.partialorder %v163_v1, 0.0  ;;  %v226_v35 = vpack.c.bf16 %v215_v32, %v211_v34 }
  0xa1   :  { %v207_v15 = vmul.f32 0.5, %v181_v8  ;;  %vm195_vm11 = vcmp.gt.f32.partialorder %v181_v8, 0.0 }
  0xa2   :  { %v218_v19 = vsel %vm194_vm9, %v163_v1, %v206_v13 }
  0xa3   :  { %284 = vmatpush.bf16.msrb.mxu0 %v223_v16  ;;  %v229_v21 = vpack.c.bf16 %v218_v19, %v218_v19  ;;  %v219_v22 = vsel %vm195_vm11, %v181_v8, %v207_v15  ;;  %v1023_v16 = vld [vmem:[%s1439_s6] sm:$0xff]  ;;  %s1102_s6 = smov 124  }
  0xa4   :  { %302 = vmatpush.bf16.msrb.mxu1 %v224_v18  ;;  %v230_v24 = vpack.c.bf16 %v219_v22, %v219_v22 }
  0xa5   :  { %v272_v25 = vsel %vm264_vm6, %v229_v21, 0  ;;  %v164_v29 = vpop.f32.mrf.mxu2 }
  0xa6   :  { %v182_v30 = vpop.f32.mrf.mxu3  ;;  %319 = vmatpush.bf16.msrb.mxu2 %v272_v25  ;;  %v275_v31 = vsel %vm264_vm6, %v230_v24, 0  ;;  %977 = vmatmul.msk.bf16.vlgmr.msrb.gmra.mxu0 %vm257_vm13, %v1022_v20 }
  0xa7   :  { %337 = vmatpush.bf16.msrb.mxu3 %v275_v31  ;;  %979 = vmatmul.msk.bf16.vlgmr.msrb.gmra.mxu1 %vm257_vm13, %v1022_v20 }
  0xaa   :  { %320 = vmatpush.bf16.msrb.mxu2 %v225_v33 }
  0xab   :  { %338 = vmatpush.bf16.msrb.mxu3 %v226_v35 }
  0xad   :  { %981 = vmatmul.msk.bf16.vlgmr.msrb.gmra.mxu2 %vm257_vm13, %v1022_v20 }
  0xae   :  { %983 = vmatmul.msk.bf16.vlgmr.msrb.gmra.mxu3 %vm257_vm13, %v1022_v20 }
  0xb6   :  { %978 = vmatmul.msk.bf16.gmra.mxu0 %vm257_vm13, %v256_v39 }
  0xb7   :  { %980 = vmatmul.msk.bf16.gmra.mxu1 %vm257_vm13, %v256_v39 }
  0xbd   :  { %982 = vmatmul.msk.bf16.gmra.mxu2 %vm257_vm13, %v256_v39 }
  0xbe   :  { %984 = vmatmul.msk.bf16.gmra.mxu3 %vm257_vm13, %v256_v39 }
 0x123   :  { %v286_v41 = vpop.f32.mrf.mxu0 }
 0x124   :  { %v304_v42 = vpop.f32.mrf.mxu1  ;;  %v287_v46 = vadd.f32 %v286_v41, %v237_v43 }
 0x125   :  { %v305_v49 = vadd.f32 %v304_v42, %v237_v43 }
 0x126   :  { %vm349_vm0 = vcmp.gt.f32.partialorder %v287_v46, 0.0  ;;  %v361_v58 = vmul.f32 0.5, %v287_v46 }
 0x127   :  { %v362_v60 = vmul.f32 0.5, %v305_v49  ;;  %vm350_vm4 = vcmp.gt.f32.partialorder %v305_v49, 0.0 }
 0x128   :  { %v373_v5 = vsel %vm349_vm0, %v287_v46, %v361_v58 }
 0x129   :  { %v374_v8 = vsel %vm350_vm4, %v305_v49, %v362_v60  ;;  %vm547_vm4 = vcmask 1043456  }
 0x12b   :  { %v288_v44 = vpop.f32.mrf.mxu0 }
 0x12c   :  { %v306_v45 = vpop.f32.mrf.mxu1  ;;  %v289_v51 = vadd.f32 %v288_v44, %v242_v48 }
 0x12d   :  { %v307_v52 = vadd.f32 %v306_v45, %v242_v48  ;;  %v1302_v45 = vpop.permute.xlu1 %399 }
 0x12e   :  { %v365_v59 = vmul.f32 0.5, %v289_v51  ;;  %vm353_vm2 = vcmp.gt.f32.partialorder %v289_v51, 0.0 }
 0x12f   :  { %v366_v62 = vmul.f32 0.5, %v307_v52  ;;  %vm354_vm5 = vcmp.gt.f32.partialorder %v307_v52, 0.0 }
 0x130   :  { %v322_v47 = vpop.f32.mrf.mxu2  ;;  %v377_v6 = vsel %vm353_vm2, %v289_v51, %v365_v59 }
 0x131   :  { %v340_v50 = vpop.f32.mrf.mxu3  ;;  %v378_v9 = vsel %vm354_vm5, %v307_v52, %v366_v62  ;;  %v387_v13 = vpack.c.bf16 %v377_v6, %v373_v5  ;;  %v323_v17 = vadd.f32 %v322_v47, %v237_v43  ;;  %v507_v6 = vld [vmem:[%s1434_s1] sm:$0xff]  ;;  %vm540_vm5 = vcmask 64512  }
 0x132   :  { %v388_v15 = vpack.c.bf16 %v378_v9, %v374_v8  ;;  %v341_v24 = vadd.f32 %v340_v50, %v237_v43 }
 0x133   :  { %v291_v54 = vpop.f32.mrf.mxu0  ;;  %v363_v26 = vmul.f32 0.5, %v323_v17  ;;  %vm351_vm9 = vcmp.gt.f32.partialorder %v323_v17, 0.0 }
 0x134   :  { %v292_v55 = vadd.f32 %v291_v54, %v247_v53  ;;  %v309_v56 = vpop.f32.mrf.mxu1  ;;  %v364_v33 = vmul.f32 0.5, %v341_v24  ;;  %vm352_vm12 = vcmp.gt.f32.partialorder %v341_v24, 0.0  ;;  %v1308_v54 = vpop.permute.xlu0 %404 }
 0x135   :  { %v310_v57 = vadd.f32 %v309_v56, %v247_v53  ;;  %v375_v36 = vsel %vm351_vm9, %v323_v17, %v363_v26  ;;  %v530_v26 = vpop.permute.xlu2 %529 }
 0x136   :  { %vm357_vm1 = vcmp.gt.f32.partialorder %v292_v55, 0.0  ;;  %v369_v61 = vmul.f32 0.5, %v292_v55  ;;  %v376_v43 = vsel %vm352_vm12, %v341_v24, %v364_v33 }
 0x137   :  { %vm358_vm3 = vcmp.gt.f32.partialorder %v310_v57, 0.0  ;;  %v370_v63 = vmul.f32 0.5, %v310_v57 }
 0x138   :  { %v381_v0 = vsel %vm357_vm1, %v292_v55, %v369_v61  ;;  %v324_v1 = vpop.f32.mrf.mxu2 }
 0x139   :  { %v391_v2 = vpack.c.bf16 %v381_v0, %v381_v0  ;;  %v382_v3 = vsel %vm358_vm3, %v310_v57, %v370_v63  ;;  %v342_v4 = vpop.f32.mrf.mxu3  ;;  %v325_v18 = vadd.f32 %v324_v1, %v242_v48 }
 0x13a   :  { %v392_v7 = vpack.c.bf16 %v382_v3, %v382_v3  ;;  %v343_v20 = vadd.f32 %v342_v4, %v242_v48 }
 0x13b   :  { %v416_v10 = vsel %vm264_vm6, %v391_v2, 0  ;;  %v293_v11 = vpop.f32.mrf.mxu0  ;;  %v367_v27 = vmul.f32 0.5, %v325_v18  ;;  %vm355_vm10 = vcmp.gt.f32.partialorder %v325_v18, 0.0 }
 0x13c   :  { %433 = vmatpush.bf16.msra.mxu0 %v416_v10  ;;  %v419_v12 = vsel %vm264_vm6, %v392_v7, 0  ;;  %v311_v14 = vpop.f32.mrf.mxu1  ;;  %v368_v29 = vmul.f32 0.5, %v343_v20  ;;  %vm356_vm11 = vcmp.gt.f32.partialorder %v343_v20, 0.0 }
 0x13d   :  { %447 = vmatpush.bf16.msra.mxu1 %v419_v12  ;;  %v379_v37 = vsel %vm355_vm10, %v325_v18, %v367_v27 }
 0x13e   :  { %v380_v41 = vsel %vm356_vm11, %v343_v20, %v368_v29  ;;  %v389_v42 = vpack.c.bf16 %v379_v37, %v375_v36  ;;  %v512_v20 = vld [vmem:[%s1441_s8 + $0x8] sm:$0x3]  ;;  %v520_v29 = vpop.permute.xlu0 %519 }
 0x13f   :  { %v390_v44 = vpack.c.bf16 %v380_v41, %v376_v43  ;;  %v587_v43 = vpop.permute.xlu2 %586 }
 0x140   :  { %v327_v19 = vpop.f32.mrf.mxu2  ;;  %434 = vmatpush.bf16.msra.mxu0 %v387_v13 }
 0x141   :  { %v328_v21 = vadd.f32 %v327_v19, %v247_v53  ;;  %v345_v22 = vpop.f32.mrf.mxu3  ;;  %448 = vmatpush.bf16.msra.mxu1 %v388_v15 }
 0x142   :  { %v346_v23 = vadd.f32 %v345_v22, %v247_v53 }
 0x143   :  { %vm359_vm7 = vcmp.gt.f32.partialorder %v328_v21, 0.0  ;;  %v371_v25 = vmul.f32 0.5, %v328_v21  ;;  %989 = vmatmul.msk.bf16.vlgmr.msra.gmra.mxu0 %vm257_vm13, %v1023_v16 }
 0x144   :  { %vm360_vm8 = vcmp.gt.f32.partialorder %v346_v23, 0.0  ;;  %v372_v28 = vmul.f32 0.5, %v346_v23  ;;  %990 = vmatmul.msk.bf16.vlgmr.msra.gmra.mxu1 %vm257_vm13, %v1023_v16 }
 0x145   :  { %v383_v30 = vsel %vm359_vm7, %v328_v21, %v371_v25  ;;  %v537_v21 = vunpack.c.l.b16 %v512_v20  ;;  %v525_v25 = vpop.permute.xlu1 %524 }
 0x146   :  { %v393_v31 = vpack.c.bf16 %v383_v30, %v383_v30  ;;  %v384_v32 = vsel %vm360_vm8, %v346_v23, %v372_v28 }
 0x147   :  { %v394_v34 = vpack.c.bf16 %v384_v32, %v384_v32  ;;  %v539_v22 = vpack.c.b16 %v537_v21, %v537_v21 }
 0x148   :  { %v422_v35 = vsel %vm264_vm6, %v393_v31, 0  ;;  %v329_v38 = vpop.f32.mrf.mxu2 }
 0x149   :  { %v347_v39 = vpop.f32.mrf.mxu3  ;;  %461 = vmatpush.bf16.msra.mxu2 %v422_v35  ;;  %v425_v40 = vsel %vm264_vm6, %v394_v34, 0 }
 0x14a   :  { %475 = vmatpush.bf16.msra.mxu3 %v425_v40 }
 0x14d   :  { %462 = vmatpush.bf16.msra.mxu2 %v389_v42  ;;  %v1025_v42 = vld [vmem:[%s1443_s10] sm:$0xff] }
 0x14e   :  { %476 = vmatpush.bf16.msra.mxu3 %v390_v44 }
 0x150   :  { %991 = vmatmul.msk.bf16.vlgmr.msra.gmra.mxu2 %vm257_vm13, %v1023_v16 }
 0x151   :  { %992 = vmatmul.msk.bf16.vlgmr.msra.gmra.mxu3 %vm257_vm13, %v1023_v16  ;;  %v1024_v16 = vld [vmem:[%s1441_s8] sm:$0xff] }
 0x1c0   :  { %v436_v46 = vpop.f32.mrf.mxu0 }
 0x1c1   :  { %v437_v47 = vadd.f32 %v436_v46, %v1302_v45  ;;  %v450_v48 = vpop.f32.mrf.mxu1 }
 0x1c2   :  { %v451_v49 = vadd.f32 %v450_v48, %v1302_v45 }
 0x1c3   :  { %v491_v50 = vmul.f32 0.5, %v437_v47  ;;  %vm483_vm14 = vcmp.gt.f32.partialorder %v437_v47, 0.0 }
 0x1c4   :  { %v492_v51 = vmul.f32 0.5, %v451_v49  ;;  %vm484_vm15 = vcmp.gt.f32.partialorder %v451_v49, 0.0 }
 0x1c5   :  { %v499_v52 = vsel %vm483_vm14, %v437_v47, %v491_v50 }
 0x1c6   :  { %v500_v53 = vsel %vm484_vm15, %v451_v49, %v492_v51  ;;  %625 = vrot.lane.b32.xlu1 %v499_v52, %s1102_s6  ;;  %v592_v51 = vpop.permute.xlu0 %591 }
 0x1c7   :  { %635 = vrot.lane.b32.xlu2 %v500_v53, %s1102_s6 }
 0x1c8   :  { %v438_v55 = vpop.f32.mrf.mxu0 }
 0x1c9   :  { %v439_v56 = vadd.f32 %v438_v55, %v1308_v54  ;;  %v452_v57 = vpop.f32.mrf.mxu1 }
 0x1ca   :  { %v453_v58 = vadd.f32 %v452_v57, %v1308_v54 }
 0x1cb   :  { %v495_v59 = vmul.f32 0.5, %v439_v56  ;;  %vm487_vm0 = vcmp.gt.f32.partialorder %v439_v56, 0.0 }
 0x1cc   :  { %v496_v60 = vmul.f32 0.5, %v453_v58  ;;  %vm488_vm1 = vcmp.gt.f32.partialorder %v453_v58, 0.0 }
 0x1cd   :  { %v503_v61 = vsel %vm487_vm0, %v439_v56, %v495_v59 }
 0x1ce   :  { %v504_v62 = vsel %vm488_vm1, %v453_v58, %v496_v60 }
 0x1cf   :  { %637 = vrot.lane.b32.xlu0 %v504_v62, %s1102_s6  ;;  %627 = vrot.lane.b32.xlu2 %v503_v61, %s1102_s6 }
 0x1d3   :  { %v464_v44 = vpop.f32.mrf.mxu2 }
 0x1d4   :  { %v478_v63 = vpop.f32.mrf.mxu3  ;;  %v465_v61 = vadd.f32 %v464_v44, %v1302_v45 }
 0x1d5   :  { %v479_v0 = vadd.f32 %v478_v63, %v1302_v45 }
 0x1d6   :  { %vm485_vm12 = vcmp.gt.f32.partialorder %v465_v61, 0.0 }
 0x1d7   :  { %v494_v1 = vmul.f32 0.5, %v479_v0  ;;  %vm486_vm2 = vcmp.gt.f32.partialorder %v479_v0, 0.0 }
 0x1d9   :  { %v502_v2 = vsel %vm486_vm2, %v479_v0, %v494_v1  ;;  %v1006_v0 = vld [vmem:[%s1445_s12] sm:$0xf]  ;;  %v1026_v1 = vld [vmem:[%s1445_s12] sm:$0x30] }
 0x1da   :  { %655 = vrot.lane.b32.xlu0 %v502_v2, %s1102_s6  ;;  %v909_v8 = vmul.f32 %v502_v2, %v502_v2 }
 0x1db   :  { %v466_v55 = vpop.f32.mrf.mxu2 }
 0x1dc   :  { %v480_v3 = vpop.f32.mrf.mxu3  ;;  %v467_v57 = vadd.f32 %v466_v55, %v1308_v54 }
 0x1dd   :  { %v481_v4 = vadd.f32 %v480_v3, %v1308_v54  ;;  %v1007_v3 = vor.u32 %v1026_v1, %v1006_v0 }
 0x1de   :  { %v497_v54 = vmul.f32 0.5, %v467_v57  ;;  %vm489_vm11 = vcmp.gt.f32.partialorder %v467_v57, 0.0 }
 0x1df   :  { %v498_v5 = vmul.f32 0.5, %v481_v4  ;;  %vm490_vm3 = vcmp.gt.f32.partialorder %v481_v4, 0.0 }
 0x1e0   :  { %v505_v45 = vsel %vm489_vm11, %v467_v57, %v497_v54 }
 0x1e1   :  { %v506_v7 = vsel %vm490_vm3, %v481_v4, %v498_v5  ;;  %v493_v4 = vmul.f32 0.5, %v465_v61 }
 0x1e2   :  { %v508_v9 = vmul.f32 %v507_v6, %v506_v7  ;;  %v908_v10 = vmul.f32 %v506_v7, %v506_v7  ;;  %657 = vrot.lane.b32.xlu1 %v506_v7, %s1102_s6  ;;  %v668_v6 = vld [vmem:[%s1446_s13 + $0x8] sm:$0xf]  ;;  %v667_v7 = vld [vmem:[%s1446_s13] sm:$0xff] }
 0x1e3   :  { %v501_v5 = vsel %vm485_vm12, %v465_v61, %v493_v4 }
 0x1e4   :  { %v911_v11 = vadd.f32 1e-08, %v908_v10  ;;  %v509_v12 = vadd.f32 %v508_v9, %v502_v2  ;;  %v1321_v13 = vadd.f32 %v909_v8, %v908_v10  ;;  %v904_v8 = vlaneseq }
 0x1e6   :  { %1039 = vlog2.f32 %v911_v11  ;;  %v513_v14 = vpack.c.bf16 %v509_v12, %v509_v12  ;;  %v905_v9 = vshrl.u32 %v904_v8, 7  ;;  %v907_v10 = vand.u32 127, %v904_v8 }
 0x1e7   :  { %v1106_v8 = vmov 8.0  }
 0x1e8   :  { %v549_v15 = vsel %vm547_vm4, %v513_v14, 0  ;;  %vm916_vm14 = vcmp.lt.s32.totalorder %v905_v9, 6  ;;  %vm917_vm15 = vcmp.lt.s32.totalorder %v907_v10, 8 }
 0x1e9   :  { %558 = vmatpush.bf16.msrb.mxu0 %v549_v15  ;;  %vm918_vm0 = vmand %vm916_vm14, %vm917_vm15 }
 0x1ec   :  { %v1040_v17 = vpop.eup %1039  ;;  %997 = vmatmul.msk.bf16.vlgmr.msrb.gmra.mxu0 %vm540_vm5, %v1024_v16 }
 0x1ed   :  { %v1326_v18 = vmul.f32 0.6931472, %v1040_v17 }
 0x1ef   :  { %v914_v19 = vsub.f32 %v1321_v13, %v1326_v18 }
 0x1f1   :  { %v1020_v11 = vadd.f32 -1.0, %v914_v19 }
 0x1f3   :  { %v919_v12 = vsel %vm918_vm0, %v1020_v11, 0.0 }
 0x1fc   :  { %998 = vmatmul.msk.bf16.gmra.mxu0 %vm540_vm5, %v539_v22 }
 0x221   :  { %v1338_v48 = vpop.permute.xlu2 %635 }
 0x229   :  { %v628_v58 = vpop.permute.xlu2 %627 }
 0x238   :  { %v626_v59 = vpop.permute.xlu1 %625 }
 0x241   :  { %v638_v14 = vpop.permute.xlu0 %637 }
 0x24c   :  { %v656_v17 = vpop.permute.xlu0 %655 }
 0x254   :  { %v658_v16 = vpop.permute.xlu1 %657 }
 0x269   :  { %v560_v23 = vpop.f32.mrf.mxu0 }
 0x26a   :  { %v561_v31 = vadd.f32 %v560_v23, %v520_v29 }
 0x26c   :  { %v572_v35 = vmul.f32 0.5, %v561_v31  ;;  %vm569_vm9 = vcmp.gt.f32.partialorder %v561_v31, 0.0 }
 0x26e   :  { %v575_v40 = vsel %vm569_vm9, %v561_v31, %v572_v35 }
 0x271   :  { %v562_v24 = vpop.f32.mrf.mxu0 }
 0x272   :  { %v563_v27 = vadd.f32 %v562_v24, %v525_v25 }
 0x274   :  { %v573_v33 = vmul.f32 0.5, %v563_v27  ;;  %vm570_vm8 = vcmp.gt.f32.partialorder %v563_v27, 0.0 }
 0x276   :  { %v576_v39 = vsel %vm570_vm8, %v563_v27, %v573_v33 }
 0x277   :  { %v580_v41 = vpack.c.bf16 %v576_v39, %v575_v40 }
 0x279   :  { %v565_v28 = vpop.f32.mrf.mxu0 }
 0x27a   :  { %v566_v30 = vadd.f32 %v565_v28, %v530_v26 }
 0x27c   :  { %vm571_vm7 = vcmp.gt.f32.partialorder %v566_v30, 0.0  ;;  %v574_v32 = vmul.f32 0.5, %v566_v30 }
 0x27e   :  { %v577_v34 = vsel %vm571_vm7, %v566_v30, %v574_v32 }
 0x27f   :  { %v581_v36 = vpack.c.bf16 %v577_v34, %v577_v34 }
 0x281   :  { %v603_v37 = vsel %vm264_vm6, %v581_v36, 0  ;;  %v567_v38 = vpop.f32.mrf.mxu0 }
 0x282   :  { %611 = vmatpush.bf16.msrb.mxu1 %v603_v37 }
 0x286   :  { %612 = vmatpush.bf16.msrb.mxu1 %v580_v41 }
 0x289   :  { %1003 = vmatmul.msk.bf16.vlgmr.msrb.gmra.mxu1 %vm257_vm13, %v1025_v42  ;;  %vm684_vm13 = vcmask 130048  }
 0x306   :  { %v614_v46 = vpop.f32.mrf.mxu1 }
 0x307   :  { %v615_v47 = vadd.f32 %v614_v46, %v587_v43 }
 0x309   :  { %vm619_vm10 = vcmp.gt.f32.partialorder %v615_v47, 0.0  ;;  %v621_v49 = vmul.f32 0.5, %v615_v47 }
 0x30b   :  { %v623_v50 = vsel %vm619_vm10, %v615_v47, %v621_v49 }
 0x30c   :  { %631 = vrot.lane.b32.xlu0 %v623_v50, %s1103_s20  ;;  %641 = vrot.lane.b32.xlu2 %v623_v50, %s1104_s7  ;;  %v629_v62 = vadd.f32 %v626_v59, %v623_v50 }
 0x30d   :  { %651 = vrot.lane.b32.xlu1 %v623_v50, %s1105_s21 }
 0x30e   :  { %v616_v52 = vpop.f32.mrf.mxu1 }
 0x30f   :  { %v617_v53 = vadd.f32 %v616_v52, %v592_v51 }
 0x311   :  { %vm620_vm6 = vcmp.gt.f32.partialorder %v617_v53, 0.0  ;;  %v622_v56 = vmul.f32 0.5, %v617_v53 }
 0x313   :  { %v624_v60 = vsel %vm620_vm6, %v617_v53, %v622_v56  ;;  %vm939_vm6 = vcmask 0  }
 0x314   :  { %643 = vrot.lane.b32.xlu0 %v624_v60, %s1104_s7  ;;  %v630_v63 = vadd.f32 %v628_v58, %v624_v60  ;;  %653 = vrot.lane.b32.xlu2 %v624_v60, %s1105_s21 }
 0x315   :  { %633 = vrot.lane.b32.xlu1 %v624_v60, %s1103_s20 }
 0x316   :  { %v663_v2 = vpack.c.bf16 %v630_v63, %v629_v62 }
 0x318   :  { %695 = vmatpush.bf16.msrb.mxu2 %v663_v2 }
 0x31b   :  { %1008 = vmatmul.msk.bf16.vlgmr.msrb.gmra.mxu2 %vm684_vm13, %v1007_v3 }
 0x31c   :  { %647 = vrot.lane.b32.xlu2 %v505_v45, %s1102_s6 }
 0x31d   :  { %645 = vrot.lane.b32.xlu1 %v501_v5, %s1102_s6  ;;  %s950_s6 = sshll.u32 %s1448_s15, 4  ;;  %s951_s6 = int_to_ptr.hbm [resolvable:$true] %s950_s6 }
 0x324   :  { %676 = vperm.xlu2 %1038, %v668_v6  }
 0x325   :  { %671 = vperm.xlu1 %1037, %v667_v7  }
 0x33e   :  { %920 = vadd.xlane.f32.xlu0 %v919_v12 }
 0x366   :  { %v642_v15 = vpop.permute.xlu2 %641 }
 0x36e   :  { %v654_v20 = vpop.permute.xlu2 %653 }
 0x36f   :  { %v660_v22 = vadd.f32 %v658_v16, %v654_v20 }
 0x376   :  { %v648_v28 = vpop.permute.xlu2 %647 }
 0x37e   :  { %v632_v25 = vpop.permute.xlu0 %631  ;;  %v1367_v37 = vpop.permute.xlu2 %676 }
 0x37f   :  { %v652_v21 = vpop.permute.xlu1 %651  ;;  %v639_v13 = vadd.f32 %v1338_v48, %v632_v25 }
 0x380   :  { %v659_v23 = vadd.f32 %v656_v17, %v652_v21 }
 0x382   :  { %v666_v24 = vpack.c.bf16 %v660_v22, %v659_v23 }
 0x384   :  { %737 = vmatpush.bf16.msra.mxu2 %v666_v24 }
 0x386   :  { %v644_v27 = vpop.permute.xlu0 %643 }
 0x387   :  { %1011 = vmatmul.msk.bf16.vlgmr.msra.gmra.mxu2 %vm684_vm13, %v1007_v3  ;;  %v634_v26 = vpop.permute.xlu1 %633  ;;  %v650_v30 = vadd.f32 %v648_v28, %v644_v27 }
 0x388   :  { %v640_v18 = vadd.f32 %v638_v14, %v634_v26 }
 0x38a   :  { %v664_v19 = vpack.c.bf16 %v640_v18, %v639_v13 }
 0x38c   :  { %709 = vmatpush.bf16.msrb.mxu3 %v664_v19 }
 0x38f   :  { %1009 = vmatmul.msk.bf16.vlgmr.msrb.gmra.mxu3 %vm684_vm13, %v1007_v3  ;;  %v646_v29 = vpop.permute.xlu1 %645 }
 0x390   :  { %v649_v31 = vadd.f32 %v646_v29, %v642_v15 }
 0x392   :  { %v665_v32 = vpack.c.bf16 %v650_v30, %v649_v31 }
 0x394   :  { %723 = vmatpush.bf16.msra.mxu1 %v665_v32 }
 0x397   :  { %1010 = vmatmul.msk.bf16.vlgmr.msra.gmra.mxu1 %vm684_vm13, %v1007_v3  ;;  %v1364_v33 = vpop.permute.xlu1 %671 }
 0x39e   :  { %v697_v34 = vpop.f32.mrf.mxu2 }
 0x39f   :  { %v698_v35 = vadd.f32 %v697_v34, %v1364_v33 }
 0x3a1   :  { %v1012_v36 = vmul.f32 -1.442695, %v698_v35 }
 0x3a3   :  { %1041 = vpow2.f32 %v1012_v36 }
 0x3a6   :  { %v699_v38 = vpop.f32.mrf.mxu2 }
 0x3a7   :  { %v700_v39 = vadd.f32 %v699_v38, %v1367_v37 }
 0x3a9   :  { %v1042_v40 = vpop.eup %1041  ;;  %v1016_v41 = vmul.f32 -1.442695, %v700_v39 }
 0x3aa   :  { %v768_v42 = vadd.f32 1.0, %v1042_v40 }
 0x3ab   :  { %1043 = vpow2.f32 %v1016_v41 }
 0x3ac   :  { %1045 = vrcp.f32 %v768_v42  ;;  %v787_v52 = vand.u32 2147483648, %v768_v42  ;;  %v785_v55 = vand.u32 2147483647, %v768_v42  ;;  %vm781_vm2 = vweird.f32 %v768_v42 }
 0x3ae   :  { %v788_v60 = vor.u32 1.1754944e-38, %v787_v52  ;;  %vm786_vm4 = vcmp.eq.f32.partialorder %v785_v55, 8.507059e+37 }
 0x3b1   :  { %v1044_v43 = vpop.eup %1043  ;;  %v921_v44 = vpop.xlane.xlu0 %920 }
 0x3b2   :  { %v1046_v46 = vpop.eup %1045  ;;  %v772_v47 = vadd.f32 1.0, %v1044_v43  ;;  %v922_v48 = vrot.slane %v921_v44, 4 }
 0x3b3   :  { %v777_v49 = vmul.f32 %v1046_v46, %v768_v42  ;;  %vm782_vm1 = vweird.f32 %v1046_v46 }
 0x3b4   :  { %1047 = vrcp.f32 %v772_v47  ;;  %v923_v51 = vadd.f32 %v922_v48, %v921_v44  ;;  %vm783_vm3 = vmor %vm781_vm2, %vm782_vm1  ;;  %v847_v54 = vand.u32 2147483648, %v772_v47  ;;  %v845_v4 = vand.u32 2147483647, %v772_v47 }
 0x3b5   :  { %v778_v50 = vsub.f32 1.0, %v777_v49  ;;  %vm841_vm7 = vweird.f32 %v772_v47  ;;  %1049 = vrcp.f32 %v1106_v8 }
 0x3b6   :  { %v924_v56 = vrot.slane %v923_v51, 2  ;;  %v848_v5 = vor.u32 1.1754944e-38, %v847_v54  ;;  %vm846_vm9 = vcmp.eq.f32.partialorder %v845_v4, 8.507059e+37 }
 0x3b7   :  { %v779_v53 = vmul.f32 %v1046_v46, %v778_v50 }
 0x3b8   :  { %v925_v58 = vadd.f32 %v924_v56, %v923_v51 }
 0x3b9   :  { %v780_v57 = vadd.f32 %v1046_v46, %v779_v53 }
 0x3ba   :  { %v1048_v59 = vpop.eup %1047  ;;  %v926_v63 = vrot.slane %v925_v58, 1 }
 0x3bb   :  { %v784_v61 = vsel %vm783_vm3, %v1046_v46, %v780_v57  ;;  %v837_v62 = vmul.f32 %v1048_v59, %v772_v47  ;;  %vm842_vm5 = vweird.f32 %v1048_v59  ;;  %v1050_v9 = vpop.eup %1049 }
 0x3bc   :  { %v789_v0 = vsel %vm786_vm4, %v788_v60, %v784_v61  ;;  %v927_v2 = vadd.f32 %v926_v63, %v925_v58  ;;  %vm843_vm8 = vmor %vm841_vm7, %vm842_vm5  ;;  %v932_v10 = vmul.f32 8.0, %v1050_v9  ;;  %vm936_vm10 = vweird.f32 %v1050_v9 }
 0x3bd   :  { %896 = vst [vmem:[%s1447_s14] sm:$0xff] %v789_v0  ;;  %v838_v1 = vsub.f32 1.0, %v837_v62 }
 0x3be   :  { %1027 = vpush %v927_v2  ;;  %v933_v11 = vsub.f32 1.0, %v932_v10 }
 0x3bf   :  { %v839_v3 = vmul.f32 %v1048_v59, %v838_v1 }
 0x3c0   :  { %v934_v12 = vmul.f32 %v1050_v9, %v933_v11 }
 0x3c1   :  { %v840_v45 = vadd.f32 %v1048_v59, %v839_v3 }
 0x3c2   :  { %v935_v14 = vadd.f32 %v1050_v9, %v934_v12 }
 0x3c3   :  { %v844_v6 = vsel %vm843_vm8, %v1048_v59, %v840_v45 }
 0x3c4   :  { %v849_v7 = vsel %vm846_vm9, %v848_v5, %v844_v6  ;;  %v937_v16 = vsel %vm936_vm10, %v1050_v9, %v935_v14 }
 0x3c5   :  { %900 = vst [vmem:[%s1447_s14 + $0x20] sm:$0xf] %v849_v7 }
 0x3ef   :  { %s1028_s29 = spop %1027 }
 0x3f0   :  { %v929_v15 = vstv %s1028_s29 }
 0x3f1   :  { %v930_v17 = vmul.f32 0.5, %v929_v15 }
 0x3f3   :  { %v938_v20 = vmul.f32 %v937_v16, %v930_v17 }
 0x3f5   :  { %940 = vst.msk [vmem:[#allocation2] sm:$0x1] %vm939_vm6, %v938_v20 }
 0x3f6   :  { %953 = dma.vmem_to_hbm [thread:$0]  %s949_s16, 16, %s951_s6, [#allocation3]  }
 0x40a   :  { %v739_v21 = vpop.f32.mrf.mxu2 }
 0x40b   :  { %v740_v22 = vadd.f32 %v739_v21, %v1364_v33 }
 0x40d   :  { %v1015_v23 = vmul.f32 -1.442695, %v740_v22 }
 0x40f   :  { %1051 = vpow2.f32 %v1015_v23 }
 0x412   :  { %v711_v24 = vpop.f32.mrf.mxu3  ;;  %v741_v25 = vpop.f32.mrf.mxu2 }
 0x413   :  { %v712_v26 = vadd.f32 %v711_v24, %v1364_v33  ;;  %v742_v13 = vadd.f32 %v741_v25, %v1367_v37 }
 0x414   :  { %v725_v18 = vpop.f32.mrf.mxu1 }
 0x415   :  { %v1052_v19 = vpop.eup %1051  ;;  %v1013_v27 = vmul.f32 -1.442695, %v712_v26  ;;  %v1019_v28 = vmul.f32 -1.442695, %v742_v13  ;;  %v726_v29 = vadd.f32 %v725_v18, %v1364_v33 }
 0x416   :  { %v771_v30 = vadd.f32 1.0, %v1052_v19 }
 0x417   :  { %1053 = vpow2.f32 %v1013_v27  ;;  %v1014_v31 = vmul.f32 -1.442695, %v726_v29 }
 0x418   :  { %1055 = vrcp.f32 %v771_v30  ;;  %v832_v49 = vand.u32 2147483648, %v771_v30  ;;  %v830_v51 = vand.u32 2147483647, %v771_v30  ;;  %vm826_vm11 = vweird.f32 %v771_v30 }
 0x419   :  { %1057 = vpow2.f32 %v1019_v28 }
 0x41a   :  { %1059 = vpow2.f32 %v1014_v31  ;;  %v713_v32 = vpop.f32.mrf.mxu3  ;;  %v833_v55 = vor.u32 1.1754944e-38, %v832_v49  ;;  %vm831_vm14 = vcmp.eq.f32.partialorder %v830_v51, 8.507059e+37 }
 0x41b   :  { %v714_v34 = vadd.f32 %v713_v32, %v1367_v37 }
 0x41c   :  { %v727_v35 = vpop.f32.mrf.mxu1 }
 0x41d   :  { %v1054_v36 = vpop.eup %1053  ;;  %v1017_v38 = vmul.f32 -1.442695, %v714_v34  ;;  %v728_v39 = vadd.f32 %v727_v35, %v1367_v37 }
 0x41e   :  { %v1056_v40 = vpop.eup %1055  ;;  %v769_v41 = vadd.f32 1.0, %v1054_v36 }
 0x41f   :  { %v1058_v42 = vpop.eup %1057  ;;  %v822_v43 = vmul.f32 %v1056_v40, %v771_v30  ;;  %1061 = vpow2.f32 %v1017_v38  ;;  %v1018_v33 = vmul.f32 -1.442695, %v728_v39  ;;  %vm827_vm13 = vweird.f32 %v1056_v40 }
 0x420   :  { %v1060_v44 = vpop.eup %1059  ;;  %1063 = vrcp.f32 %v769_v41  ;;  %v775_v47 = vadd.f32 1.0, %v1058_v42  ;;  %vm828_vm12 = vmor %vm826_vm11, %vm827_vm13  ;;  %v800_v56 = vand.u32 2147483647, %v769_v41  ;;  %v802_v61 = vand.u32 2147483648, %v769_v41 }
 0x421   :  { %v823_v46 = vsub.f32 1.0, %v822_v43  ;;  %v1385_v48 = vadd.f32 1.0, %v1060_v44  ;;  %1065 = vpow2.f32 %v1018_v33  ;;  %vm796_vm15 = vweird.f32 %v769_v41 }
 0x422   :  { %1067 = vrcp.f32 %v775_v47  ;;  %vm1396_vm0 = vcmp.eq.f32.partialorder %v800_v56, 8.507059e+37  ;;  %v803_v45 = vor.u32 1.1754944e-38, %v802_v61  ;;  %v890_v7 = vand.u32 2147483647, %v775_v47 }
 0x423   :  { %v824_v50 = vmul.f32 %v1056_v40, %v823_v46  ;;  %1069 = vrcp.f32 %v1385_v48  ;;  %v892_v8 = vand.u32 2147483648, %v775_v47  ;;  %v815_v11 = vand.u32 2147483647, %v1385_v48 }
 0x424   :  { %v817_v12 = vand.u32 2147483648, %v1385_v48  ;;  %vm886_vm3 = vweird.f32 %v775_v47  ;;  %vm811_vm5 = vweird.f32 %v1385_v48  ;;  %vm891_vm8 = vcmp.eq.f32.partialorder %v890_v7, 8.507059e+37 }
 0x425   :  { %v1062_v37 = vpop.eup %1061  ;;  %v825_v52 = vadd.f32 %v1056_v40, %v824_v50  ;;  %v893_v23 = vor.u32 1.1754944e-38, %v892_v8  ;;  %vm816_vm10 = vcmp.eq.f32.partialorder %v815_v11, 8.507059e+37 }
 0x426   :  { %v1064_v53 = vpop.eup %1063  ;;  %v1388_v57 = vadd.f32 1.0, %v1062_v37  ;;  %v818_v25 = vor.u32 1.1754944e-38, %v817_v12 }
 0x427   :  { %v1066_v58 = vpop.eup %1065  ;;  %v829_v59 = vsel %vm828_vm12, %v1056_v40, %v825_v52  ;;  %v792_v60 = vmul.f32 %v1064_v53, %v769_v41  ;;  %vm797_vm1 = vweird.f32 %v1064_v53 }
 0x428   :  { %v834_v62 = vsel %vm831_vm14, %v833_v55, %v829_v59  ;;  %1071 = vrcp.f32 %v1388_v57  ;;  %v1068_v63 = vpop.eup %1067  ;;  %v1394_v1 = vadd.f32 1.0, %v1066_v58  ;;  %vm798_vm2 = vmor %vm796_vm15, %vm797_vm1  ;;  %v860_v19 = vand.u32 2147483647, %v1388_v57 }
 0x429   :  { %899 = vst [vmem:[%s1447_s14 + $0x18] sm:$0xff] %v834_v62  ;;  %v793_v0 = vsub.f32 1.0, %v792_v60  ;;  %v1070_v2 = vpop.eup %1069  ;;  %v882_v3 = vmul.f32 %v1068_v63, %v775_v47  ;;  %vm887_vm4 = vweird.f32 %v1068_v63  ;;  %v862_v27 = vand.u32 2147483648, %v1388_v57 }
 0x42a   :  { %v807_v5 = vmul.f32 %v1070_v2, %v1385_v48  ;;  %1073 = vrcp.f32 %v1394_v1  ;;  %vm812_vm7 = vweird.f32 %v1070_v2  ;;  %vm888_vm9 = vmor %vm886_vm3, %vm887_vm4  ;;  %vm856_vm11 = vweird.f32 %v1388_v57 }
 0x42b   :  { %v794_v4 = vmul.f32 %v1064_v53, %v793_v0  ;;  %v883_v6 = vsub.f32 1.0, %v882_v3  ;;  %vm813_vm6 = vmor %vm811_vm5, %vm812_vm7  ;;  %vm861_vm14 = vcmp.eq.f32.partialorder %v860_v19, 8.507059e+37  ;;  %v863_v36 = vor.u32 1.1754944e-38, %v862_v27 }
 0x42c   :  { %v808_v10 = vsub.f32 1.0, %v807_v5  ;;  %v877_v38 = vand.u32 2147483648, %v1394_v1  ;;  %v875_v41 = vand.u32 2147483647, %v1394_v1 }
 0x42d   :  { %v795_v9 = vadd.f32 %v1064_v53, %v794_v4  ;;  %v884_v15 = vmul.f32 %v1068_v63, %v883_v6 }
 0x42e   :  { %v1072_v14 = vpop.eup %1071  ;;  %v809_v17 = vmul.f32 %v1070_v2, %v808_v10  ;;  %v878_v33 = vor.u32 1.1754944e-38, %v877_v38 }
 0x42f   :  { %v799_v16 = vsel %vm798_vm2, %v1064_v53, %v795_v9  ;;  %v852_v20 = vmul.f32 %v1072_v14, %v1388_v57  ;;  %v885_v22 = vadd.f32 %v1068_v63, %v884_v15  ;;  %vm857_vm13 = vweird.f32 %v1072_v14 }
 0x430   :  { %v804_v21 = vsel %vm1396_vm0, %v803_v45, %v799_v16  ;;  %v810_v24 = vadd.f32 %v1070_v2, %v809_v17  ;;  %v1074_v13 = vpop.eup %1073  ;;  %vm858_vm12 = vmor %vm856_vm11, %vm857_vm13  ;;  %vm871_vm0 = vweird.f32 %v1394_v1  ;;  %vm876_vm2 = vcmp.eq.f32.partialorder %v875_v41, 8.507059e+37 }
 0x431   :  { %897 = vst [vmem:[%s1447_s14 + $0x8] sm:$0xff] %v804_v21  ;;  %v853_v26 = vsub.f32 1.0, %v852_v20  ;;  %v889_v18 = vsel %vm888_vm9, %v1068_v63, %v885_v22  ;;  %v867_v31 = vmul.f32 %v1074_v13, %v1394_v1  ;;  %vm872_vm15 = vweird.f32 %v1074_v13 }
 0x432   :  { %v894_v28 = vsel %vm891_vm8, %v893_v23, %v889_v18  ;;  %v814_v29 = vsel %vm813_vm6, %v1070_v2, %v810_v24  ;;  %vm873_vm1 = vmor %vm871_vm0, %vm872_vm15 }
 0x433   :  { %v854_v30 = vmul.f32 %v1072_v14, %v853_v26  ;;  %903 = vst [vmem:[%s1447_s14 + $0x38] sm:$0xf] %v894_v28  ;;  %v819_v32 = vsel %vm816_vm10, %v818_v25, %v814_v29  ;;  %v868_v35 = vsub.f32 1.0, %v867_v31 }
 0x434   :  { %898 = vst [vmem:[%s1447_s14 + $0x10] sm:$0xff] %v819_v32 }
 0x435   :  { %v855_v34 = vadd.f32 %v1072_v14, %v854_v30  ;;  %v869_v40 = vmul.f32 %v1074_v13, %v868_v35 }
 0x437   :  { %v859_v39 = vsel %vm858_vm12, %v1072_v14, %v855_v34  ;;  %v870_v43 = vadd.f32 %v1074_v13, %v869_v40 }
 0x438   :  { %v864_v42 = vsel %vm861_vm14, %v863_v36, %v859_v39 }
 0x439   :  { %901 = vst [vmem:[%s1447_s14 + $0x28] sm:$0xf] %v864_v42  ;;  %v874_v44 = vsel %vm873_vm1, %v1074_v13, %v870_v43 }
 0x43a   :  { %v879_v46 = vsel %vm876_vm2, %v878_v33, %v874_v44 }
 0x43b   :  { %902 = vst [vmem:[%s1447_s14 + $0x30] sm:$0xf] %v879_v46 }
 0x43c   :  { %1099 = dma.done.wait [#allocation3], 16  }
 0x43d   :  { %1100 = vsyncadd [#allocation3], 4294967280 }
 0x43e   :  { %960 = vsyncpa [#allocation3], 1 }

</bundles_post_ra>
